<compile_context>
chip_gen: v6e
topology: v6e:2x2x1
jax: 0.10.0
libtpu: 0.0.40
codegen_flags: <defaults>
</compile_context>

<pallas_src>
import functools

import jax
import jax.numpy as jnp
from jax.experimental import pallas as pl
from jax.experimental.pallas import tpu as pltpu

H1 = 256                       # fc1 width
H2 = 128                       # fc2 width
HEAD_PAD = 128                 # fused actor|critic head, zero-padded lane-dense width
B_TOTAL = H1 + H2 + HEAD_PAD   # packed bias row length (640 = 5 * 128)


def _round_up(x, m):
    return (x + m - 1) // m * m


def _pick_tile_b(batch):
    """Batch tile: <=128 (single tile, mult. of 8) for small B; otherwise
    128..512-row tiles with >=2 grid steps (v7x megacore sharding)."""
    if batch <= 128:
        return _round_up(batch, 8)
    return min(512, _round_up(pl.cdiv(batch, 2), 128))


# ----------------------------------------------------------------------------
# Kernel: fused bf16 MLP + fused actor/critic head, one lane-dense f32 output.
# ----------------------------------------------------------------------------
def actor_critic_kernel(x_ref, w1_ref, w2_ref, wh_ref, b_ref, out_ref):
    x = x_ref[...].astype(jnp.bfloat16)               # (TILE_B, state_dim)

    # static, 128-aligned lane slices of the packed f32 bias row
    b1 = b_ref[:, 0:H1]                                # (1, 256)
    b2 = b_ref[:, H1:H1 + H2]                          # (1, 128)
    bh = b_ref[:, H1 + H2:B_TOTAL]                     # (1, 128)

    # fc1 + relu  (bf16 x bf16 -> f32 accumulate)
    h1 = jnp.dot(x, w1_ref[...], preferred_element_type=jnp.float32)
    h1 = jnp.maximum(h1 + b1, 0.0).astype(jnp.bfloat16)   # (TILE_B, 256)

    # fc2 + relu
    h2 = jnp.dot(h1, w2_ref[...], preferred_element_type=jnp.float32)
    h2 = jnp.maximum(h2 + b2, 0.0).astype(jnp.bfloat16)   # (TILE_B, 128)

    # fused actor|critic head -> single 128-wide unmasked f32 store
    out = jnp.dot(h2, wh_ref[...], preferred_element_type=jnp.float32)
    out_ref[...] = out + bh                            # (TILE_B, 128)


# ----------------------------------------------------------------------------
# One-time parameter packing (NOT in the per-call path).
# ----------------------------------------------------------------------------
def pack_params(params):
    action_dim = params["wa"].shape[1]
    assert action_dim + 1 <= HEAD_PAD, "action_dim + 1 must fit in 128 lanes"

    w1 = params["w1"].astype(jnp.bfloat16)             # (state_dim, 256)
    w2 = params["w2"].astype(jnp.bfloat16)             # (256, 128)

    # fused head weight: [actor | critic | zero-pad] -> (128, 128) bf16
    wh = jnp.zeros((H2, HEAD_PAD), jnp.float32)
    wh = wh.at[:, :action_dim].set(params["wa"])
    wh = wh.at[:, action_dim:action_dim + 1].set(params["wc"])
    wh = wh.astype(jnp.bfloat16)

    # single packed f32 bias row: [b1 | b2 | ba | bc | zero-pad] -> (1, 640)
    b = jnp.zeros((1, B_TOTAL), jnp.float32)
    b = b.at[:, 0:H1].set(params["b1"])
    b = b.at[:, H1:H1 + H2].set(params["b2"])
    b = b.at[:, H1 + H2:H1 + H2 + action_dim].set(params["ba"])
    b = b.at[:, H1 + H2 + action_dim:H1 + H2 + action_dim + 1].set(params["bc"])

    return dict(w1=w1, w2=w2, wh=wh, b=b, action_dim=action_dim)


# ----------------------------------------------------------------------------
# Jitted forward: a single pallas_call over batch tiles.
# ----------------------------------------------------------------------------
@functools.partial(jax.jit, static_argnames=("action_dim",))
def _forward_impl(state, w1, w2, wh, b, *, action_dim):
    batch, state_dim = state.shape
    tile_b = _pick_tile_b(batch)
    grid_b = pl.cdiv(batch, tile_b)

    out = pl.pallas_call(
        actor_critic_kernel,
        out_shape=jax.ShapeDtypeStruct((batch, HEAD_PAD), jnp.float32),
        grid=(grid_b,),
        in_specs=[
            pl.BlockSpec((tile_b, state_dim), lambda i: (i, 0)),   # state tile
            pl.BlockSpec((state_dim, H1), lambda i: (0, 0)),       # w1 (resident)
            pl.BlockSpec((H1, H2), lambda i: (0, 0)),              # w2 (resident)
            pl.BlockSpec((H2, HEAD_PAD), lambda i: (0, 0)),        # fused head W
            pl.BlockSpec((1, B_TOTAL), lambda i: (0, 0)),          # packed biases
        ],
        out_specs=pl.BlockSpec((tile_b, HEAD_PAD), lambda i: (i, 0)),
        compiler_params=pltpu.CompilerParams(
            dimension_semantics=("parallel",)),                    # megacore on v7x
    )(state, w1, w2, wh, b)

    logits = out[:, :action_dim]
    value = out[:, action_dim:action_dim + 1]
    return logits, value


def actor_critic_forward(state, packed):
    """state: (B, state_dim) f32. packed: output of pack_params()."""
    return _forward_impl(state, packed["w1"], packed["w2"], packed["wh"],
                         packed["b"], action_dim=packed["action_dim"])


# ----------------------------------------------------------------------------
# Deterministic parameter init (mimics nn.Linear's U(-1/sqrt(in), 1/sqrt(in)));
# weights stored pre-transposed as (in_features, out_features).
# ----------------------------------------------------------------------------
def init_params(key, state_dim, action_dim):
    def linear(key, fan_in, fan_out):
        kw, kb = jax.random.split(key)
        bound = 1.0 / jnp.sqrt(fan_in)
        w = jax.random.uniform(kw, (fan_in, fan_out), jnp.float32, -bound, bound)
        b = jax.random.uniform(kb, (1, fan_out), jnp.float32, -bound, bound)
        return w, b

    k1, k2, k3, k4 = jax.random.split(key, 4)
    w1, b1 = linear(k1, state_dim, H1)
    w2, b2 = linear(k2, H1, H2)
    wa, ba = linear(k3, H2, action_dim)
    wc, bc = linear(k4, H2, 1)
    return dict(w1=w1, b1=b1, w2=w2, b2=b2, wa=wa, ba=ba, wc=wc, bc=bc)


# Pure-JAX f32 reference for correctness checking (kernel uses bf16 matmuls,
# so tolerances are loosened accordingly).
def reference_forward(state, p):
    h1 = jnp.maximum(state @ p["w1"] + p["b1"], 0.0)
    h2 = jnp.maximum(h1 @ p["w2"] + p["b2"], 0.0)
    return h2 @ p["wa"] + p["ba"], h2 @ p["wc"] + p["bc"]


if __name__ == "__main__":
    STATE_DIM, ACTION_DIM = 32, 8

    key = jax.random.PRNGKey(0)
    k_params, k_state_small, k_state_big = jax.random.split(key, 3)

    params = init_params(k_params, STATE_DIM, ACTION_DIM)
    packed = pack_params(params)

    # small batch (single tile)
    B = 8
    state = jax.random.normal(k_state_small, (B, STATE_DIM), dtype=jnp.float32)
    logits, value = actor_critic_forward(state, packed)
    jax.block_until_ready((logits, value))

    ref_logits, ref_value = reference_forward(state, params)
    assert logits.shape == (B, ACTION_DIM) and value.shape == (B, 1)
    assert jnp.allclose(logits, ref_logits, atol=5e-2, rtol=5e-2)
    assert jnp.allclose(value, ref_value, atol=5e-2, rtol=5e-2)

    # larger ragged batch (multi-step parallel grid + partial last tile)
    B2 = 260
    state2 = jax.random.normal(k_state_big, (B2, STATE_DIM), dtype=jnp.float32)
    logits2, value2 = actor_critic_forward(state2, packed)
    jax.block_until_ready((logits2, value2))

    ref_logits2, ref_value2 = reference_forward(state2, params)
    assert logits2.shape == (B2, ACTION_DIM) and value2.shape == (B2, 1)
    assert jnp.allclose(logits2, ref_logits2, atol=5e-2, rtol=5e-2)
    assert jnp.allclose(value2, ref_value2, atol=5e-2, rtol=5e-2)

    print("KERNEL_OK")
</pallas_src>

<mosaic_0001>
module attributes {stable_mosaic.version = 11 : i64} {
  func.func @actor_critic_kernel(%arg0: i32, %arg1: memref<8x32xf32, #tpu.memory_space<vmem>>, %arg2: memref<32x256xbf16, #tpu.memory_space<vmem>>, %arg3: memref<256x128xbf16, #tpu.memory_space<vmem>>, %arg4: memref<128x128xbf16, #tpu.memory_space<vmem>>, %arg5: memref<1x512xf32, #tpu.memory_space<vmem>>, %arg6: memref<8x128xf32, #tpu.memory_space<vmem>>) attributes {dimension_semantics = [#tpu.dimension_semantics<parallel>], iteration_bounds = array<i64: 1>, scalar_prefetch = 0 : i64, scratch_operands = 0 : i64, tpu.core_type = #tpu.core_type<tc>, window_params = [{transform_indices = @transform_0, window_bounds = array<i64: 8, 32>}, {pipeline_mode = #tpu.pipeline_mode<synchronous>, transform_indices = @transform_1, window_bounds = array<i64: 32, 256>}, {pipeline_mode = #tpu.pipeline_mode<synchronous>, transform_indices = @transform_2, window_bounds = array<i64: 256, 128>}, {pipeline_mode = #tpu.pipeline_mode<synchronous>, transform_indices = @transform_3, window_bounds = array<i64: 128, 128>}, {pipeline_mode = #tpu.pipeline_mode<synchronous>, transform_indices = @transform_4, window_bounds = array<i64: 1, 512>}, {transform_indices = @transform_5, window_bounds = array<i64: 8, 128>}]} {
    %c0 = arith.constant 0 : index
    %c0_0 = arith.constant 0 : index
    %0 = vector.load %arg1[%c0, %c0_0] : memref<8x32xf32, #tpu.memory_space<vmem>>, vector<8x32xf32>
    %1 = arith.truncf %0 : vector<8x32xf32> to vector<8x32xbf16>
    %c0_1 = arith.constant 0 : index
    %c0_2 = arith.constant 0 : index
    %2 = vector.load %arg5[%c0_1, %c0_2] : memref<1x512xf32, #tpu.memory_space<vmem>>, vector<1x256xf32>
    %c0_3 = arith.constant 0 : index
    %c256 = arith.constant 256 : index
    %3 = vector.load %arg5[%c0_3, %c256] : memref<1x512xf32, #tpu.memory_space<vmem>>, vector<1x128xf32>
    %c0_4 = arith.constant 0 : index
    %c384 = arith.constant 384 : index
    %4 = vector.load %arg5[%c0_4, %c384] : memref<1x512xf32, #tpu.memory_space<vmem>>, vector<1x128xf32>
    %c0_5 = arith.constant 0 : index
    %c0_6 = arith.constant 0 : index
    %5 = vector.load %arg2[%c0_5, %c0_6] : memref<32x256xbf16, #tpu.memory_space<vmem>>, vector<32x256xbf16>
    %cst = arith.constant dense<0.000000e+00> : vector<8x256xf32>
    %6 = tpu.matmul %1, %5, %cst {dimension_numbers = #tpu.dot_dimension_numbers<[1], [0], [0], [1], [0, 0, 1, 1], [], []>} : vector<8x32xbf16>, vector<32x256xbf16>, vector<8x256xf32> -> vector<8x256xf32>
    %7 = vector.broadcast %2 : vector<1x256xf32> to vector<8x256xf32>
    %8 = arith.addf %6, %7 : vector<8x256xf32>
    %cst_7 = arith.constant 0.000000e+00 : f32
    %9 = vector.broadcast %cst_7 : f32 to vector<8x256xf32>
    %10 = arith.maximumf %8, %9 : vector<8x256xf32>
    %11 = arith.truncf %10 : vector<8x256xf32> to vector<8x256xbf16>
    %c0_8 = arith.constant 0 : index
    %c0_9 = arith.constant 0 : index
    %12 = vector.load %arg3[%c0_8, %c0_9] : memref<256x128xbf16, #tpu.memory_space<vmem>>, vector<256x128xbf16>
    %cst_10 = arith.constant dense<0.000000e+00> : vector<8x128xf32>
    %13 = tpu.matmul %11, %12, %cst_10 {dimension_numbers = #tpu.dot_dimension_numbers<[1], [0], [0], [1], [0, 0, 1, 1], [], []>} : vector<8x256xbf16>, vector<256x128xbf16>, vector<8x128xf32> -> vector<8x128xf32>
    %14 = vector.broadcast %3 : vector<1x128xf32> to vector<8x128xf32>
    %15 = arith.addf %13, %14 : vector<8x128xf32>
    %cst_11 = arith.constant 0.000000e+00 : f32
    %16 = vector.broadcast %cst_11 : f32 to vector<8x128xf32>
    %17 = arith.maximumf %15, %16 : vector<8x128xf32>
    %18 = arith.truncf %17 : vector<8x128xf32> to vector<8x128xbf16>
    %c0_12 = arith.constant 0 : index
    %c0_13 = arith.constant 0 : index
    %19 = vector.load %arg4[%c0_12, %c0_13] : memref<128x128xbf16, #tpu.memory_space<vmem>>, vector<128x128xbf16>
    %cst_14 = arith.constant dense<0.000000e+00> : vector<8x128xf32>
    %20 = tpu.matmul %18, %19, %cst_14 {dimension_numbers = #tpu.dot_dimension_numbers<[1], [0], [0], [1], [0, 0, 1, 1], [], []>} : vector<8x128xbf16>, vector<128x128xbf16>, vector<8x128xf32> -> vector<8x128xf32>
    %21 = vector.broadcast %4 : vector<1x128xf32> to vector<8x128xf32>
    %22 = arith.addf %20, %21 : vector<8x128xf32>
    %c0_15 = arith.constant 0 : index
    %c0_16 = arith.constant 0 : index
    %23 = vector.load %arg6[%c0_15, %c0_16] : memref<8x128xf32, #tpu.memory_space<vmem>>, vector<8x128xf32>
    tpu.vector_store %arg6[%c0_15, %c0_16], %22 {strides = array<i32>} : memref<8x128xf32, #tpu.memory_space<vmem>>, vector<8x128xf32>,
    return
  }
  func.func @transform_0(%arg0: i32) -> (i32, i32) {
    %c0_i32 = arith.constant 0 : i32
    %c0_i32_0 = arith.constant 0 : i32
    return %arg0, %c0_i32 : i32, i32
  }
  func.func @transform_1(%arg0: i32) -> (i32, i32) {
    %c0_i32 = arith.constant 0 : i32
    %c0_i32_0 = arith.constant 0 : i32
    %c0_i32_1 = arith.constant 0 : i32
    return %c0_i32, %c0_i32_0 : i32, i32
  }
  func.func @transform_2(%arg0: i32) -> (i32, i32) {
    %c0_i32 = arith.constant 0 : i32
    %c0_i32_0 = arith.constant 0 : i32
    %c0_i32_1 = arith.constant 0 : i32
    return %c0_i32, %c0_i32_0 : i32, i32
  }
  func.func @transform_3(%arg0: i32) -> (i32, i32) {
    %c0_i32 = arith.constant 0 : i32
    %c0_i32_0 = arith.constant 0 : i32
    %c0_i32_1 = arith.constant 0 : i32
    return %c0_i32, %c0_i32_0 : i32, i32
  }
  func.func @transform_4(%arg0: i32) -> (i32, i32) {
    %c0_i32 = arith.constant 0 : i32
    %c0_i32_0 = arith.constant 0 : i32
    %c0_i32_1 = arith.constant 0 : i32
    return %c0_i32, %c0_i32_0 : i32, i32
  }
  func.func @transform_5(%arg0: i32) -> (i32, i32) {
    %c0_i32 = arith.constant 0 : i32
    %c0_i32_0 = arith.constant 0 : i32
    return %arg0, %c0_i32 : i32, i32
  }
}

</mosaic_0001>

<bundles_post_ra>
// kernel: _forward_impl.1
= control target key start
LH: loop header
LB: loop body
LE: loop exit
PB: predicated region body
PF: predicated region fallthrough
CT: control target
= control target key end

     0   :  { %10 = vsyncpa [#allocation3], 0  ;;  %s731_s0 = inlined_call_operand.hbm [shape: f32[8,32], index: 0, kind: input, shape index: {}]   ;;  %s732_s1 = inlined_call_operand.hbm [shape: bf16[32,256], index: 1, kind: input, shape index: {}]   ;;  %s733_s2 = inlined_call_operand.hbm [shape: bf16[256,128], index: 2, kind: input, shape index: {}]   ;;  %s734_s3 = inlined_call_operand.hbm [shape: bf16[128,128], index: 3, kind: input, shape index: {}]   ;;  %s735_s4 = inlined_call_operand.vmem [shape: f32[1,512], index: 4, kind: input, shape index: {}]   ;;  %s736_s5 = inlined_call_operand.vmem [shape: f32[8,128], index: 5, kind: output, shape index: {}]  }
   0x1   :  { %11 = vsyncpa [#allocation5], 0 }
   0x2   :  { %12 = vsyncpa [#allocation8], 0  ;;  %s666_s18 = smov [#allocation4]  }
   0x3   :  { %s28_s19 = sshll.u32 %s666_s18, 4  ;;  %s29_s19 = int_to_ptr.vmem [resolvable:$true] %s28_s19 }
   0x4   :  { %s588_s20 = scalar_lea.vmem %s29_s19, 512  ;;  %p593_p1 = scmp.lt.s32.totalorder %s29_s19, %s29_s19 }
   0x5   :  { %p589_p0 = scmp.ne.s32.totalorder %s29_s19, %s588_s20  ;;  %p594_p2 = scmp.lt.s32.totalorder %s588_s20, %s588_s20 }
   0x7   :  { %p595_p3 = por %p594_p2, %p593_p1 }
   0x9   :  { %p596_p4 = pnand %p595_p3, %p589_p0 }
   0xb   :  { %599 = shalt.err (!%p596_p4)
}
   0xc   :  { %s667_s21 = smov 128   ;;  %s668_s22 = smov 8  }
   0xd   :  { %34 = dma.hbm_to_vmem [thread:$0]  %s732_s1, 512, %s29_s19, [#allocation5], %s667_s21, %s667_s21, %s668_s22  }
   0xe   :  { %s669_s25 = smov [#allocation2]   ;;  %s670_s27 = smov [#allocation6]  }
   0xf   :  { %s19_s26 = sshll.u32 %s669_s25, 4  ;;  %s40_s28 = sshll.u32 %s670_s27, 4  ;;  %s20_s26 = int_to_ptr.vmem [resolvable:$true] %s19_s26  ;;  %s41_s28 = int_to_ptr.vmem [resolvable:$true] %s40_s28 }
  0x10   :  { %s608_s29 = scalar_lea.vmem %s20_s26, 128  ;;  %p613_p6 = scmp.lt.s32.totalorder %s20_s26, %s20_s26 }
  0x11   :  { %p609_p5 = scmp.ne.s32.totalorder %s20_s26, %s608_s29  ;;  %p614_p7 = scmp.lt.s32.totalorder %s608_s29, %s608_s29 }
  0x13   :  { %p615_p8 = por %p614_p7, %p613_p6 }
  0x15   :  { %p616_p9 = pnand %p615_p8, %p609_p5 }
  0x17   :  { %619 = shalt.err (!%p616_p9)
}
  0x18   :  { %22 = dma.hbm_to_vmem [thread:$0]  %s731_s0, 128, %s20_s26, [#allocation3]  }
  0x19   :  { %s628_s7 = scalar_lea.vmem %s41_s28, 2048  ;;  %p633_p11 = scmp.lt.s32.totalorder %s41_s28, %s41_s28 }
  0x1a   :  { %p629_p10 = scmp.ne.s32.totalorder %s41_s28, %s628_s7  ;;  %p634_p12 = scmp.lt.s32.totalorder %s628_s7, %s628_s7 }
  0x1c   :  { %p635_p13 = por %p634_p12, %p633_p11 }
  0x1e   :  { %p636_p0 = pnand %p635_p13, %p629_p10 }
  0x20   :  { %639 = shalt.err (!%p636_p0)
}
  0x21   :  { %s671_s1 = smov 64   ;;  %s672_s8 = smov 4  }
  0x22   :  { %46 = dma.hbm_to_vmem [thread:$0]  %s733_s2, 2048, %s41_s28, [#allocation5], %s671_s1, %s671_s1, %s672_s8  }
  0x23   :  { %s673_s11 = smov [#allocation7]  }
  0x24   :  { %s52_s12 = sshll.u32 %s673_s11, 4  ;;  %s53_s12 = int_to_ptr.vmem [resolvable:$true] %s52_s12 }
  0x25   :  { %s648_s13 = scalar_lea.vmem %s53_s12, 1024  ;;  %p653_p2 = scmp.lt.s32.totalorder %s53_s12, %s53_s12 }
  0x26   :  { %p649_p1 = scmp.ne.s32.totalorder %s53_s12, %s648_s13  ;;  %p654_p3 = scmp.lt.s32.totalorder %s648_s13, %s648_s13 }
  0x28   :  { %p655_p4 = por %p654_p3, %p653_p2 }
  0x2a   :  { %p656_p5 = pnand %p655_p4, %p649_p1 }
  0x2c   :  { %659 = shalt.err (!%p656_p5)
}
  0x2d   :  { %58 = dma.hbm_to_vmem [thread:$0]  %s734_s3, 1024, %s53_s12, [#allocation8], %s671_s1, %s671_s1, %s672_s8  }
  0x2e   :  { %660 = dma.done.wait [#allocation3], 128  }
  0x2f   :  { %661 = vsyncadd [#allocation3], 4294967168 }
  0x30   :  { %662 = dma.done.wait [#allocation5], 2560  }
  0x31   :  { %663 = vsyncadd [#allocation5], 4294964736 }
  0x32   :  { %664 = dma.done.wait [#allocation8], 1024  }
  0x33   :  { %665 = vsyncadd [#allocation8], 4294966272  ;;  %v674_v0 = vmov 0   ;;  %v550_v1 = vld [vmem:[#allocation4 + $0x14] ss:$8 sps:$4 sm:$0xff]   ;;  %vm114_vm0 = vcmask 261120   ;;  %v84_v29 = vlaneseq }
  0x34   :  { %150 = vmatprep.mubr.bf16.mxu0 %v674_v0  ;;  %v552_v2 = vld [vmem:[#allocation4 + $0x10] ss:$8 sps:$4 sm:$0xff]   ;;  %130 = vmatprep.subr.bf16.mxu0 %v550_v1  ;;  %v553_v3 = vld [vmem:[#allocation4 + $0x4] ss:$8 sps:$4 sm:$0xff]   ;;  %v555_v4 = vld [vmem:[#allocation4] ss:$8 sps:$4 sm:$0xff]  }
  0x35   :  { %v74_v5 = vld [vmem:[#allocation2] sm:$0xff]  ;;  %131 = vmatpush1.bf16.msra.mxu0 %v552_v2  ;;  %v558_v8 = vld [vmem:[#allocation6 + $0x70] sm:$0xff]   ;;  %v560_v11 = vld [vmem:[#allocation6 + $0x68] sm:$0xff]   ;;  %v675_v24 = vmov 0.0   ;;  %v85_v30 = vshrl.u32 %v84_v29, 7  ;;  %vm676_vm1 = vmmov 0  }
  0x36   :  { %v556_v6 = vld [vmem:[#allocation6 + $0x78] sm:$0xff]   ;;  %132 = vmatprep.subr.bf16.mxu0 %v553_v3  ;;  %v75_v9 = vpack.c.bf16 %v74_v5, %v74_v5  ;;  %v559_v10 = vld [vmem:[#allocation6 + $0x30] sm:$0xff]   ;;  %v561_v12 = vld [vmem:[#allocation6 + $0x28] sm:$0xff]  }
  0x37   :  { %v557_v7 = vld [vmem:[#allocation6 + $0x38] sm:$0xff]   ;;  %488 = vmatprep.subr.bf16.mxu1 %v556_v6  ;;  %v562_v13 = vld [vmem:[#allocation6 + $0x60] sm:$0xff]   ;;  %v566_v17 = vld [vmem:[#allocation6 + $0x50] sm:$0xff]   ;;  %v86_v31 = vsub.s32 0, %v85_v30  ;;  %v90_v33 = vsub.s32 1, %v85_v30 }
  0x38   :  { %489 = vmatpush3.bf16.msra.mxu1 %v557_v7  ;;  %v563_v14 = vld [vmem:[#allocation6 + $0x20] sm:$0xff]   ;;  %v564_v15 = vld [vmem:[#allocation6 + $0x58] sm:$0xff]   ;;  %v567_v18 = vld [vmem:[#allocation6 + $0x10] sm:$0xff]  }
  0x39   :  { %133 = vmatpush1.bf16.msra.mxu0 %v555_v4  ;;  %490 = vmatprep.subr.bf16.mxu1 %v558_v8  ;;  %v565_v16 = vld [vmem:[#allocation6 + $0x18] sm:$0xff]   ;;  %v568_v19 = vld [vmem:[#allocation6 + $0x48] sm:$0xff]   ;;  %v570_v21 = vld [vmem:[#allocation6 + $0x40] sm:$0xff]  }
  0x3a   :  { %v569_v20 = vld [vmem:[#allocation6 + $0x8] sm:$0xff]   ;;  %v571_v22 = vld [vmem:[#allocation6] sm:$0xff]   ;;  %v572_v23 = vld [vmem:[#allocation7 + $0x38] sm:$0xff]   ;;  %519 = vmatprep.subr.bf16.mxu0 %v675_v24 }
  0x3b   :  { %v573_v25 = vld [vmem:[#allocation7 + $0x30] sm:$0xff]   ;;  %v574_v26 = vld [vmem:[#allocation7 + $0x28] sm:$0xff]   ;;  %v575_v27 = vld [vmem:[#allocation7 + $0x20] sm:$0xff]  }
  0x3c   :  { %461 = vmatmul.mubr.msk.bf16.vlgmr.msra.gmra.mxu0 %vm114_vm0, %v75_v9  ;;  %491 = vmatpush3.bf16.msra.mxu1 %v559_v10  ;;  %v576_v28 = vld [vmem:[#allocation7 + $0x18] sm:$0xff]   ;;  %v577_v46 = vld [vmem:[#allocation7 + $0x10] sm:$0xff]   ;;  %v578_v47 = vld [vmem:[#allocation7 + $0x8] sm:$0xff]  }
  0x3d   :  { %492 = vmatprep.subr.bf16.mxu1 %v560_v11  ;;  %520 = vmatpush3.bf16.msra.mxu0 %v572_v23  ;;  %v76_v32 = vld [vmem:[%s735_s4] sm:$0x3]  ;;  %v579_v48 = vld [vmem:[#allocation7] sm:$0xff]   ;;  %v462_v50 = vld [vmem:[%s735_s4 + $0x2] ss:$0 sm:$0xff] }
  0x3e   :  { %521 = vmatprep.subr.bf16.mxu0 %v675_v24  ;;  %v87_v34 = vrot.slane %v76_v32, %v86_v31  ;;  %v91_v35 = vrot.slane %v76_v32, %v90_v33  ;;  %535 = vmatprep.mubr.msk.bf16.mxu0 %vm676_vm1, %v675_v24  ;;  %v479_v58 = vld [vmem:[%s735_s4 + $0x3] ss:$0 sm:$0xff] }
  0x40   :  { %493 = vmatpush3.bf16.msra.mxu1 %v561_v12 }
  0x41   :  { %494 = vmatprep.subr.bf16.mxu1 %v562_v13  ;;  %522 = vmatpush3.bf16.msra.mxu0 %v573_v25 }
  0x42   :  { %523 = vmatprep.subr.bf16.mxu0 %v675_v24 }
  0x44   :  { %495 = vmatpush3.bf16.msra.mxu1 %v563_v14 }
  0x45   :  { %496 = vmatprep.subr.bf16.mxu1 %v564_v15  ;;  %524 = vmatpush3.bf16.msra.mxu0 %v574_v26 }
  0x46   :  { %525 = vmatprep.subr.bf16.mxu0 %v675_v24 }
  0x48   :  { %497 = vmatpush3.bf16.msra.mxu1 %v565_v16 }
  0x49   :  { %498 = vmatprep.subr.bf16.mxu1 %v566_v17  ;;  %526 = vmatpush3.bf16.msra.mxu0 %v575_v27 }
  0x4a   :  { %527 = vmatprep.subr.bf16.mxu0 %v675_v24 }
  0x4c   :  { %499 = vmatpush3.bf16.msra.mxu1 %v567_v18 }
  0x4d   :  { %500 = vmatprep.subr.bf16.mxu1 %v568_v19  ;;  %528 = vmatpush3.bf16.msra.mxu0 %v576_v28 }
  0x4e   :  { %529 = vmatprep.subr.bf16.mxu0 %v675_v24 }
  0x50   :  { %501 = vmatpush3.bf16.msra.mxu1 %v569_v20 }
  0x51   :  { %502 = vmatprep.subr.bf16.mxu1 %v570_v21  ;;  %530 = vmatpush3.bf16.msra.mxu0 %v577_v46 }
  0x52   :  { %531 = vmatprep.subr.bf16.mxu0 %v675_v24 }
  0x54   :  { %503 = vmatpush3.bf16.msra.mxu1 %v571_v22 }
  0x55   :  { %532 = vmatpush3.bf16.msra.mxu0 %v578_v47 }
  0x56   :  { %533 = vmatprep.subr.bf16.mxu0 %v675_v24 }
  0x59   :  { %534 = vmatpush3.bf16.msra.mxu0 %v579_v48 }
  0xfc   :  { %v152_v36 = vpop.f32.mrf.mxu0 }
  0xfd   :  { %v153_v37 = vadd.f32 %v152_v36, %v87_v34 }
  0xfe   :  { %v154_v38 = vpop.f32.mrf.mxu0 }
  0xff   :  { %v155_v39 = vadd.f32 %v154_v38, %v91_v35  ;;  %v159_v40 = vmax.f32 %v153_v37, 0.0 }
 0x100   :  { %v156_v41 = vpop.f32.mrf.mxu0 }
 0x101   :  { %v160_v42 = vmax.f32 %v155_v39, 0.0  ;;  %v161_v45 = vpack.c.bf16 %v159_v40, %v159_v40 }
 0x102   :  { %v157_v43 = vpop.f32.mrf.mxu0 }
 0x103   :  { %v162_v44 = vpack.c.bf16 %v160_v42, %v160_v42 }
 0x105   :  { %329 = vmatprep.mubr.bf16.mxu1 %v162_v44 }
 0x106   :  { %330 = vmatmul.mubr.bf16.vlgmr.msra.gmra.mxu1 %v161_v45 }
 0x1c6   :  { %v504_v49 = vpop.f32.mrf.mxu1 }
 0x1c8   :  { %v505_v51 = vpop.f32.mrf.mxu1 }
 0x1c9   :  { %v506_v52 = vadd.f32 %v505_v51, %v504_v49 }
 0x1ca   :  { %v507_v53 = vpop.f32.mrf.mxu1 }
 0x1cb   :  { %v332_v54 = vadd.f32 %v506_v52, %v462_v50 }
 0x1cc   :  { %v508_v55 = vpop.f32.mrf.mxu1 }
 0x1cd   :  { %v337_v56 = vmax.f32 %v332_v54, 0.0 }
 0x1cf   :  { %v338_v57 = vpack.c.bf16 %v337_v56, %v337_v56 }
 0x1d1   :  { %536 = vmatmul.mubr.bf16.vlgmr.msra.gmra.mxu0 %v338_v57 }
 0x291   :  { %v443_v59 = vpop.f32.mrf.mxu0 }
 0x292   :  { %v444_v60 = vadd.f32 %v479_v58, %v443_v59 }
 0x293   :  { %v537_v61 = vpop.f32.mrf.mxu0 }
 0x294   :  { %449 = vst [vmem:[%s736_s5] sm:$0xff] %v444_v60 }
 0x295   :  { %v446_v62 = vpop.f32.mrf.mxu0 }
 0x297   :  { %v538_v63 = vpop.f32.mrf.mxu0 }
 0x298   :  { %454 = vsyncpa [#allocation3], 1 }
 0x299   :  { %455 = vsyncpa [#allocation5], 1 }
 0x29a   :  { %456 = vsyncpa [#allocation8], 1 }

</bundles_post_ra>
